<compile_context>
chip_gen: v6e
topology: v6e:2x2x1
jax: 0.10.0
libtpu: 0.0.40
codegen_flags: <defaults>
</compile_context>

<pallas_src>
import jax
import jax.numpy as jnp
from jax.experimental import pallas as pl
from jax.experimental.pallas import tpu as pltpu

F_IN = 4     # input features
H = 10       # hidden features (true)
H_PAD = 16   # hidden features padded to a multiple of 8 sublanes
O = 3        # output features (true)
O_PAD = 8    # output features padded to 8 lanes (cuts writeback 16x vs 128)


def _round_up(n, m):
    return ((n + m - 1) // m) * m


def iris_mlp_kernel(x_ref, w1_ref, b1_ref, w2_ref, b2_ref, o_ref):
    """One batch tile: fc1 -> ReLU -> fc2, contractions on the MXU."""
    x = x_ref[...]                                                  # [tm, 4]

    # fc1: [tm,4] @ [4,16] on the MXU, bias + ReLU on the VPU.
    h = jnp.dot(x, w1_ref[...], preferred_element_type=jnp.float32)
    h = jnp.maximum(h + b1_ref[...], 0.0)                           # [tm, 16]

    # fc2: [tm,16] @ [16,8] on the MXU (padded rows/cols are zero -> inert).
    out = jnp.dot(h, w2_ref[...], preferred_element_type=jnp.float32)
    out = out + b2_ref[...]                                         # [tm, 8]

    o_ref[...] = out.astype(o_ref.dtype)


def pad_params(w1, b1, w2, b2):
    """One-time zero-padding of the tiny resident operands (hoisted out of the
    forward path so each call does not pay 4 extra XLA pad ops)."""
    dtype = jnp.float32
    w1p = jnp.zeros((F_IN, H_PAD), dtype).at[:, :H].set(w1.astype(dtype))
    b1p = jnp.zeros((1, H_PAD), dtype).at[:, :H].set(b1.reshape(1, H).astype(dtype))
    w2p = jnp.zeros((H_PAD, O_PAD), dtype).at[:H, :O].set(w2.astype(dtype))
    b2p = jnp.zeros((1, O_PAD), dtype).at[:, :O].set(b2.reshape(1, O).astype(dtype))
    return w1p, b1p, w2p, b2p


def iris_net_forward(x, padded_params, *, block_rows=8192, min_pallas_batch=1024):
    """Forward pass equivalent to PyTorch IrisNet: fc2(relu(fc1(x))).

    Weights are stored [in_features, out_features] so the math is x @ W + b
    (same result as PyTorch's x @ W.T with its [out, in] storage).
    """
    w1p, b1p, w2p, b2p = padded_params
    B = x.shape[0]
    dtype = jnp.float32
    xf = x.astype(dtype)

    # Small-batch fallback: at Iris scale the pallas_call is pure launch
    # overhead — let XLA fuse instead.  (Padded lanes are zero, so slicing the
    # result is exact.)
    if B < min_pallas_batch:
        h = jnp.maximum(xf @ w1p + b1p, 0.0)
        return (h @ w2p + b2p)[:, :O]

    # Batch tiling: large tiles amortize per-step overhead; ensure >=2 tiles
    # for mid-size batches so v7x's two TensorCores both get work.
    tm = min(block_rows, _round_up(pl.cdiv(B, 2), 8))
    b_pad = _round_up(B, tm)
    xp = xf if b_pad == B else jnp.pad(xf, ((0, b_pad - B), (0, 0)))
    grid = (b_pad // tm,)

    flops = 2 * B * (F_IN * H + H * O)
    bytes_accessed = 4 * (xp.size + b_pad * O_PAD
                          + w1p.size + b1p.size + w2p.size + b2p.size)

    out_padded = pl.pallas_call(
        iris_mlp_kernel,
        out_shape=jax.ShapeDtypeStruct((b_pad, O_PAD), dtype),
        grid_spec=pltpu.PrefetchScalarGridSpec(
            num_scalar_prefetch=0,
            grid=grid,
            in_specs=[
                pl.BlockSpec((tm, F_IN), lambda i: (i, 0)),        # streamed x tile
                pl.BlockSpec((F_IN, H_PAD), lambda i: (0, 0)),     # resident w1
                pl.BlockSpec((1, H_PAD), lambda i: (0, 0)),        # resident b1
                pl.BlockSpec((H_PAD, O_PAD), lambda i: (0, 0)),    # resident w2
                pl.BlockSpec((1, O_PAD), lambda i: (0, 0)),        # resident b2
            ],
            out_specs=pl.BlockSpec((tm, O_PAD), lambda i: (i, 0)),
        ),
        compiler_params=pltpu.CompilerParams(
            # Batch tiles are independent -> shard across v7x's 2 TensorCores.
            dimension_semantics=("parallel",),
        ),
        cost_estimate=pl.CostEstimate(
            flops=flops, transcendentals=0, bytes_accessed=bytes_accessed),
    )(xp, w1p, b1p, w2p, b2p)

    # Strip lane/batch padding outside the kernel (padding is inert zeros).
    return out_padded[:B, :O]


def init_params(key):
    # Deterministic synthetic init (PyTorch-style uniform bounds 1/sqrt(fan_in)).
    k1, k2, k3, k4 = jax.random.split(key, 4)
    bound1 = 1.0 / jnp.sqrt(4.0)
    bound2 = 1.0 / jnp.sqrt(10.0)
    w1 = jax.random.uniform(k1, (4, 10), jnp.float32, -bound1, bound1)
    b1 = jax.random.uniform(k2, (1, 10), jnp.float32, -bound1, bound1)
    w2 = jax.random.uniform(k3, (10, 3), jnp.float32, -bound2, bound2)
    b2 = jax.random.uniform(k4, (1, 3), jnp.float32, -bound2, bound2)
    return w1, b1, w2, b2


if __name__ == "__main__":
    key = jax.random.PRNGKey(0)
    kx, kx2, kp = jax.random.split(key, 3)

    w1, b1, w2, b2 = init_params(kp)
    params = pad_params(w1, b1, w2, b2)   # padded once, reused across calls

    # Small Iris-style batch, forced through the Pallas kernel for validation.
    x = jax.random.normal(kx, (8, 4), dtype=jnp.float32)
    out = jax.block_until_ready(iris_net_forward(x, params, min_pallas_batch=0))
    ref = jnp.maximum(x @ w1 + b1, 0.0) @ w2 + b2
    assert out.shape == (8, 3)
    # Loose tolerance: MXU f32 dots may use reduced-precision passes.
    assert jnp.allclose(out, ref, atol=2e-2, rtol=2e-2)

    # Non-multiple-of-8 batch: exercises batch padding and a 2-tile grid.
    x2 = jax.random.normal(kx2, (300, 4), dtype=jnp.float32)
    out2 = jax.block_until_ready(iris_net_forward(x2, params, min_pallas_batch=0))
    ref2 = jnp.maximum(x2 @ w1 + b1, 0.0) @ w2 + b2
    assert out2.shape == (300, 3)
    assert jnp.allclose(out2, ref2, atol=2e-2, rtol=2e-2)

    print("KERNEL_OK")
</pallas_src>

<mosaic_0001>
module attributes {stable_mosaic.version = 11 : i64} {
  func.func @iris_mlp_kernel(%arg0: i32, %arg1: memref<8x4xf32, #tpu.memory_space<vmem>>, %arg2: memref<4x16xf32, #tpu.memory_space<vmem>>, %arg3: memref<1x16xf32, #tpu.memory_space<vmem>>, %arg4: memref<16x8xf32, #tpu.memory_space<vmem>>, %arg5: memref<1x8xf32, #tpu.memory_space<vmem>>, %arg6: memref<8x8xf32, #tpu.memory_space<vmem>>) attributes {dimension_semantics = [#tpu.dimension_semantics<parallel>], iteration_bounds = array<i64: 1>, scalar_prefetch = 0 : i64, scratch_operands = 0 : i64, tpu.core_type = #tpu.core_type<tc>, window_params = [{transform_indices = @transform_0, window_bounds = array<i64: 8, 4>}, {pipeline_mode = #tpu.pipeline_mode<synchronous>, transform_indices = @transform_1, window_bounds = array<i64: 4, 16>}, {pipeline_mode = #tpu.pipeline_mode<synchronous>, transform_indices = @transform_2, window_bounds = array<i64: 1, 16>}, {pipeline_mode = #tpu.pipeline_mode<synchronous>, transform_indices = @transform_3, window_bounds = array<i64: 16, 8>}, {pipeline_mode = #tpu.pipeline_mode<synchronous>, transform_indices = @transform_4, window_bounds = array<i64: 1, 8>}, {transform_indices = @transform_5, window_bounds = array<i64: 8, 8>}]} {
    %c0 = arith.constant 0 : index
    %c0_0 = arith.constant 0 : index
    %0 = vector.load %arg1[%c0, %c0_0] : memref<8x4xf32, #tpu.memory_space<vmem>>, vector<8x4xf32>
    %c0_1 = arith.constant 0 : index
    %c0_2 = arith.constant 0 : index
    %1 = vector.load %arg2[%c0_1, %c0_2] : memref<4x16xf32, #tpu.memory_space<vmem>>, vector<4x16xf32>
    %cst = arith.constant dense<0.000000e+00> : vector<8x16xf32>
    %2 = tpu.matmul %0, %1, %cst {dimension_numbers = #tpu.dot_dimension_numbers<[1], [0], [0], [1], [0, 0, 1, 1], [], []>} : vector<8x4xf32>, vector<4x16xf32>, vector<8x16xf32> -> vector<8x16xf32>
    %c0_3 = arith.constant 0 : index
    %c0_4 = arith.constant 0 : index
    %3 = vector.load %arg3[%c0_3, %c0_4] : memref<1x16xf32, #tpu.memory_space<vmem>>, vector<1x16xf32>
    %4 = vector.broadcast %3 : vector<1x16xf32> to vector<8x16xf32>
    %5 = arith.addf %2, %4 : vector<8x16xf32>
    %cst_5 = arith.constant 0.000000e+00 : f32
    %6 = vector.broadcast %cst_5 : f32 to vector<8x16xf32>
    %7 = arith.maximumf %5, %6 : vector<8x16xf32>
    %c0_6 = arith.constant 0 : index
    %c0_7 = arith.constant 0 : index
    %8 = vector.load %arg4[%c0_6, %c0_7] : memref<16x8xf32, #tpu.memory_space<vmem>>, vector<16x8xf32>
    %cst_8 = arith.constant dense<0.000000e+00> : vector<8x8xf32>
    %9 = tpu.matmul %7, %8, %cst_8 {dimension_numbers = #tpu.dot_dimension_numbers<[1], [0], [0], [1], [0, 0, 1, 1], [], []>} : vector<8x16xf32>, vector<16x8xf32>, vector<8x8xf32> -> vector<8x8xf32>
    %c0_9 = arith.constant 0 : index
    %c0_10 = arith.constant 0 : index
    %10 = vector.load %arg5[%c0_9, %c0_10] : memref<1x8xf32, #tpu.memory_space<vmem>>, vector<1x8xf32>
    %11 = vector.broadcast %10 : vector<1x8xf32> to vector<8x8xf32>
    %12 = arith.addf %9, %11 : vector<8x8xf32>
    %c0_11 = arith.constant 0 : index
    %c0_12 = arith.constant 0 : index
    %13 = vector.load %arg6[%c0_11, %c0_12] : memref<8x8xf32, #tpu.memory_space<vmem>>, vector<8x8xf32>
    tpu.vector_store %arg6[%c0_11, %c0_12], %12 {strides = array<i32>} : memref<8x8xf32, #tpu.memory_space<vmem>>, vector<8x8xf32>,
    return
  }
  func.func @transform_0(%arg0: i32) -> (i32, i32) {
    %c0_i32 = arith.constant 0 : i32
    %c0_i32_0 = arith.constant 0 : i32
    return %arg0, %c0_i32 : i32, i32
  }
  func.func @transform_1(%arg0: i32) -> (i32, i32) {
    %c0_i32 = arith.constant 0 : i32
    %c0_i32_0 = arith.constant 0 : i32
    %c0_i32_1 = arith.constant 0 : i32
    return %c0_i32, %c0_i32_0 : i32, i32
  }
  func.func @transform_2(%arg0: i32) -> (i32, i32) {
    %c0_i32 = arith.constant 0 : i32
    %c0_i32_0 = arith.constant 0 : i32
    %c0_i32_1 = arith.constant 0 : i32
    return %c0_i32, %c0_i32_0 : i32, i32
  }
  func.func @transform_3(%arg0: i32) -> (i32, i32) {
    %c0_i32 = arith.constant 0 : i32
    %c0_i32_0 = arith.constant 0 : i32
    %c0_i32_1 = arith.constant 0 : i32
    return %c0_i32, %c0_i32_0 : i32, i32
  }
  func.func @transform_4(%arg0: i32) -> (i32, i32) {
    %c0_i32 = arith.constant 0 : i32
    %c0_i32_0 = arith.constant 0 : i32
    %c0_i32_1 = arith.constant 0 : i32
    return %c0_i32, %c0_i32_0 : i32, i32
  }
  func.func @transform_5(%arg0: i32) -> (i32, i32) {
    %c0_i32 = arith.constant 0 : i32
    %c0_i32_0 = arith.constant 0 : i32
    return %arg0, %c0_i32 : i32, i32
  }
}

</mosaic_0001>

<bundles_post_ra>
// kernel: tpu_custom_call.1
= control target key start
LH: loop header
LB: loop body
LE: loop exit
PB: predicated region body
PF: predicated region fallthrough
CT: control target
= control target key end

     0   :  { %vm34_vm0 = vcmask 1043456   ;;  %v255_v2 = vmov 0.0   ;;  %vm256_vm1 = vmmov 0   ;;  %vm30_vm2 = vcmask 31744   ;;  %s309_s0 = inlined_call_operand.vmem [shape: f32[8,4], index: 0, kind: input, shape index: {}]   ;;  %s310_s1 = inlined_call_operand.vmem [shape: f32[4,16], index: 1, kind: input, shape index: {}]   ;;  %s311_s2 = inlined_call_operand.vmem [shape: f32[1,16], index: 2, kind: input, shape index: {}]   ;;  %s312_s3 = inlined_call_operand.vmem [shape: f32[16,8], index: 3, kind: input, shape index: {}]   ;;  %s313_s4 = inlined_call_operand.vmem [shape: f32[1,8], index: 4, kind: input, shape index: {}]   ;;  %s314_s5 = inlined_call_operand.hbm [shape: f32[8,8], index: 5, kind: output, shape index: {}]  }
   0x1   :  { %v22_v0 = vld [vmem:[%s310_s1] sm:$0xf]  ;;  %218 = vmatprep.subr.mxu0 %v255_v2  ;;  %220 = vmatprep.mubr.msk.f32.mxu0 %vm256_vm1, %v255_v2 }
   0x2   :  { %v21_v1 = vld [vmem:[%s309_s0] sm:$0xff] }
   0x3   :  { %10 = vsyncpa [#allocation3], 0  ;;  %219 = vmatpush3.msk.msra.mxu0 %vm34_vm0, %v22_v0  ;;  %223 = vmatprep.subr.mxu1 %v255_v2  ;;  %v110_v3 = vld [vmem:[%s312_s3 + $0x8] sm:$0xff]  ;;  %v109_v4 = vld [vmem:[%s312_s3] sm:$0xff]  ;;  %vm118_vm3 = vcmask 130048   ;;  %s257_s28 = smov [#allocation2]  }
   0x4   :  { %221 = vmatmul.mubr.msk.f32.vlgmr.msra.gmra.mxu0 %vm30_vm2, %v21_v1  ;;  %227 = vmatprep.mubr.msk.f32.mxu1 %vm256_vm1, %v255_v2  ;;  %v208_v5 = vld [vmem:[%s311_s2] ss:$0 sm:$0xff]  ;;  %s200_s29 = sshll.u32 %s257_s28, 4  ;;  %vm192_vm4 = vcmask 64512   ;;  %s201_s29 = int_to_ptr.vmem [resolvable:$true] %s200_s29 }
   0x5   :  { %224 = vmatpush3.msra.mxu1 %v110_v3  ;;  %v211_v10 = vld [vmem:[%s313_s4] ss:$0 sm:$0xff]  ;;  %s233_s3 = scalar_lea.vmem %s201_s29, 128  ;;  %p238_p1 = scmp.lt.s32.totalorder %s201_s29, %s201_s29 }
   0x6   :  { %225 = vmatprep.subr.mxu1 %v255_v2  ;;  %p234_p0 = scmp.ne.s32.totalorder %s201_s29, %s233_s3  ;;  %p239_p2 = scmp.lt.s32.totalorder %s233_s3, %s233_s3 }
   0x7   :  { %226 = vmatpush3.msra.mxu1 %v109_v4 }
   0x8   :  { %p240_p3 = por %p239_p2, %p238_p1 }
   0xa   :  { %p241_p4 = pnand %p240_p3, %p234_p0 }
  0xc4   :  { %v104_v6 = vpop.f32.mrf.mxu0 }
  0xc5   :  { %v105_v7 = vadd.f32 %v208_v5, %v104_v6 }
  0xc6   :  { %v222_v8 = vpop.f32.mrf.mxu0 }
  0xc7   :  { %v108_v9 = vmax.f32 %v105_v7, 0.0 }
  0xc9   :  { %228 = vmatmul.mubr.msk.f32.vlgmr.msra.gmra.mxu1 %vm118_vm3, %v108_v9 }
 0x189   :  { %v188_v11 = vpop.f32.mrf.mxu1 }
 0x18a   :  { %v189_v12 = vadd.f32 %v211_v10, %v188_v11 }
 0x18b   :  { %v229_v13 = vpop.f32.mrf.mxu1 }
 0x18c   :  { %193 = vst.msk [vmem:[#allocation2] sm:$0xff] %vm192_vm4, %v189_v12 }
 0x18d   :  { %244 = shalt.err (!%p241_p4)
}
 0x18e   :  { %203 = dma.vmem_to_hbm [thread:$0]  %s201_s29, 128, %s314_s5, [#allocation3]  }
 0x18f   :  { %253 = dma.done.wait [#allocation3], 128  }
 0x190   :  { %254 = vsyncadd [#allocation3], 4294967168 }
 0x191   :  { %207 = vsyncpa [#allocation3], 1 }

</bundles_post_ra>
